<compile_context>
chip_gen: v7x
topology: tpu7x:2x2x1
jax: 0.10.0
libtpu: 0.0.40
codegen_flags: <defaults>
</compile_context>

<pallas_src>
import functools

import jax
import jax.numpy as jnp
from jax import lax
from jax.experimental import pallas as pl
from jax.experimental.pallas import tpu as pltpu

_F32 = jnp.float32
_BF16 = jnp.bfloat16
_NEG_INF = -1e30


# ----------------------------------------------------------------------------
# Small helpers
# ----------------------------------------------------------------------------
def _pick_tile(n, quantum, cap):
    """Largest multiple of `quantum` <= cap that divides n; falls back to n
    (full extent), which always satisfies the Mosaic (8,128) block rule."""
    best = n
    t = quantum
    while t <= min(n, cap):
        if n % t == 0:
            best = t
        t += quantum
    return best


def _vmem_limit(nbytes):
    return int(min(120 * 1024 * 1024, max(8 * 1024 * 1024, 2 * int(nbytes))))


def _nbytes(x):
    return int(x.size) * x.dtype.itemsize


# ----------------------------------------------------------------------------
# Kernel A: visual projection  feat = img_flat @ w_vis + b_vis
#   grid = (row blocks [parallel], K blocks [arbitrary, streamed & pipelined])
# ----------------------------------------------------------------------------
def _vis_proj_kernel(x_ref, w_ref, b_ref, o_ref, acc_ref):
    @pl.when(pl.program_id(1) == 0)
    def _init():
        acc_ref[...] = jnp.zeros_like(acc_ref)

    acc_ref[...] += jnp.dot(x_ref[...], w_ref[...],
                            preferred_element_type=_F32)

    @pl.when(pl.program_id(1) == pl.num_programs(1) - 1)
    def _finalize():
        o_ref[...] = acc_ref[...] + b_ref[...]


def _visual_projection(img_flat_bf, w_vis_bf, b_vis):
    M, K = img_flat_bf.shape
    D = w_vis_bf.shape[1]
    tm = _pick_tile(M, 8, 256)       # row tile (parallel axis)
    tk = _pick_tile(K, 128, 512)     # reduction tile (streamed)
    grid = (M // tm, K // tk)

    # Actual tile accounting (double-buffered inputs/outputs + accumulator).
    est_vmem = (2 * (tm * tk + tk * D) * 2
                + 2 * tm * D * 4
                + tm * D * 4 + 2 * D * 4)
    cost = pl.CostEstimate(
        flops=2 * M * K * D,
        transcendentals=0,
        bytes_accessed=_nbytes(img_flat_bf) + _nbytes(w_vis_bf)
        + _nbytes(b_vis) + M * D * 4)

    return pl.pallas_call(
        _vis_proj_kernel,
        out_shape=jax.ShapeDtypeStruct((M, D), _F32),
        grid_spec=pltpu.PrefetchScalarGridSpec(
            num_scalar_prefetch=0,
            grid=grid,
            in_specs=[
                pl.BlockSpec((tm, tk), lambda i, k: (i, k)),   # img tile (bf16)
                pl.BlockSpec((tk, D), lambda i, k: (k, 0)),    # weight tile (bf16)
                pl.BlockSpec((1, D), lambda i, k: (0, 0)),     # bias (resident)
            ],
            out_specs=pl.BlockSpec((tm, D), lambda i, k: (i, 0)),
            scratch_shapes=[pltpu.VMEM((tm, D), _F32)],
        ),
        compiler_params=pltpu.CompilerParams(
            dimension_semantics=("parallel", "arbitrary"),
            vmem_limit_bytes=_vmem_limit(est_vmem)),
        cost_estimate=cost,
    )(img_flat_bf, w_vis_bf, b_vis)


# ----------------------------------------------------------------------------
# Kernel B: temporal-transformer fusion head + VideoCLIP logits.
# Every operand is indexed with [...] right before its single use, so the same
# code runs on Pallas Refs (lazy VMEM loads) and on plain arrays (reference).
# ----------------------------------------------------------------------------
def _head_math(feat, text_t, attn_bias, pos, in_w, in_b, out_w, out_b,
               ln1_w, ln1_b, ln2_w, ln2_b, fc_w, fc_b, pj_w, pj_b,
               le_a, le_b, logit_scale, *, fast):
    T, D = pos.shape
    BT = feat.shape[0]
    B = BT // T
    n_head = D // 64
    hd = D // n_head

    if fast:
        recip = lambda v: pl.reciprocal(v, approx=True)      # EUP slot
    else:
        recip = lambda v: 1.0 / v

    def layer_norm(x, w, b, eps=1e-12):   # module's TF-style LayerNorm
        u = jnp.mean(x, axis=-1, keepdims=True)
        s = jnp.mean((x - u) ** 2, axis=-1, keepdims=True)
        return w[...] * ((x - u) * lax.rsqrt(s + eps)) + b[...]

    def l2n(v, eps=1e-12):
        return v * lax.rsqrt(jnp.sum(v * v, axis=-1, keepdims=True) + eps)

    def mxm(a, w):                         # bf16 operands -> MXU, f32 accumulate
        return jnp.dot(a.astype(_BF16), w[...], preferred_element_type=_F32)

    # --- encode_image tail: per-frame features -> front embedding ------------
    x_btd = feat[...].reshape(B, T, D)
    front = jnp.mean(x_btd, axis=1)                          # image_emb_front

    # --- video_header 'Transf' fusion (1 ResidualAttentionBlock) -------------
    x = (x_btd + pos[...][None, :, :]).reshape(BT, D)

    # x = x + MHA(LN1(x)).  No head-split transposes: static lane slices per
    # head, score/PV matmuls batched over all B*T rows with a block-diagonal
    # video mask, head merge folded into the out-projection rows.
    xn = layer_norm(x, ln1_w, ln1_b)
    qkv = mxm(xn, in_w) + in_b[...]                          # (BT, 3D)
    bias = attn_bias[...]                                    # (BT, BT) additive mask
    ow = out_w[...]                                          # (D, D) bf16
    scale = 1.0 / float(hd) ** 0.5

    attn = jnp.zeros((BT, D), _F32)
    for h in range(n_head):                                  # static unroll
        q_h = qkv[:, h * hd:(h + 1) * hd].astype(_BF16)
        k_h = qkv[:, D + h * hd:D + (h + 1) * hd].astype(_BF16)
        v_h = qkv[:, 2 * D + h * hd:2 * D + (h + 1) * hd].astype(_BF16)
        s = lax.dot_general(q_h, k_h, (((1,), (1,)), ((), ())),
                            preferred_element_type=_F32) * scale + bias
        s = s - jnp.max(s, axis=-1, keepdims=True)
        p = jnp.exp(s)
        p = p * recip(jnp.sum(p, axis=-1, keepdims=True))
        o_h = jnp.dot(p.astype(_BF16), v_h, preferred_element_type=_F32)
        attn = attn + jnp.dot(o_h.astype(_BF16), ow[h * hd:(h + 1) * hd, :],
                              preferred_element_type=_F32)
    x = x + attn + out_b[...]

    # x = x + MLP(LN2(x)) with QuickGELU.
    xn2 = layer_norm(x, ln2_w, ln2_b)
    hid = mxm(xn2, fc_w) + fc_b[...]                         # (BT, 4D)
    hid = hid * recip(1.0 + jnp.exp(-1.702 * hid))           # QuickGELU
    x = x + mxm(hid, pj_w) + pj_b[...]

    image_emb = jnp.mean(x.reshape(B, T, D), axis=1)         # (B, D)

    # --- VideoCLIP head -------------------------------------------------------
    image_emb_n = l2n(image_emb)
    front_n = l2n(front)

    # get_orthogonal_gain: elementwise, on the normalized front (as in torch).
    l2sums = jnp.sum(front_n * front_n, axis=-1, keepdims=True)
    maps = image_emb_n * front_n * recip(l2sums) * front_n
    gain = image_emb_n - maps

    new_gain = mxm(mxm(gain, le_a), le_b)                    # low-rank correction
    new_vec = l2n(new_gain + front_n)

    # text normalization on the pre-transposed (D, n_text) layout (per column).
    tt = text_t[...]
    t_n = tt * lax.rsqrt(jnp.sum(tt * tt, axis=0, keepdims=True) + 1e-12)

    # logit_scale.exp() — no clamp, matching the module's forward.
    ls = jnp.exp(logit_scale[0, 0] * jnp.ones((1, 1), _F32))

    # Fused lane-dense logits: one (2B, D) @ (D, n_text) MXU matmul; split in
    # the wrapper into logits_new / logits_after.
    both = jnp.concatenate([new_vec, image_emb_n], axis=0)
    logits = ls * jnp.dot(both.astype(_BF16), t_n.astype(_BF16),
                          preferred_element_type=_F32)
    return image_emb_n, front_n, logits


def _head_kernel(*refs):
    in_refs, (emb_ref, front_ref, logits_ref) = refs[:-3], refs[-3:]
    emb, front, logits = _head_math(*in_refs, fast=True)
    emb_ref[...] = emb
    front_ref[...] = front
    logits_ref[...] = logits


def _fusion_head(feat, tail):
    text_t, attn_bias, pos = tail[0], tail[1], tail[2]
    T, D = pos.shape
    BT = feat.shape[0]
    B = BT // T
    n_text = text_t.shape[1]
    n_head = D // 64
    inputs = (feat,) + tuple(tail)

    vmem = functools.partial(pl.BlockSpec, memory_space=pltpu.MemorySpace.VMEM)
    smem = functools.partial(pl.BlockSpec, memory_space=pltpu.MemorySpace.SMEM)
    in_specs = [vmem() for _ in range(len(inputs) - 1)] + [smem()]  # logit_scale

    in_bytes = sum(_nbytes(x) for x in inputs)
    out_bytes = (2 * B * D + 2 * B * n_text) * 4
    flops = (2 * BT * D * (3 * D + D + 8 * D)        # qkv + out-proj + mlp
             + 4 * BT * BT * D                       # attention scores + PV
             + 2 * B * D * 16 * 2                    # low-rank correction
             + 2 * (2 * B) * D * n_text)             # fused logits
    cost = pl.CostEstimate(
        flops=flops,
        transcendentals=BT * 4 * D + n_head * BT * BT,
        bytes_accessed=in_bytes + out_bytes)

    return pl.pallas_call(
        _head_kernel,
        out_shape=(jax.ShapeDtypeStruct((B, D), _F32),           # image_emb (normed)
                   jax.ShapeDtypeStruct((B, D), _F32),           # image_emb_front
                   jax.ShapeDtypeStruct((2 * B, n_text), _F32)), # fused logits slab
        in_specs=in_specs,
        out_specs=(vmem(), vmem(), vmem()),
        compiler_params=pltpu.CompilerParams(
            vmem_limit_bytes=_vmem_limit(4 * in_bytes + 4 * BT * 4 * D * 4)),
        cost_estimate=cost,
    )(*inputs)


# ----------------------------------------------------------------------------
# Wrapper: layout plumbing only (flatten, bf16 weight pass-through, text
# pre-transpose, block-diagonal video mask), then the two pallas_calls.
# ----------------------------------------------------------------------------
def _prepare(image, text_emb, params):
    (w_vis, b_vis, pos, in_w, in_b, out_w, out_b, ln1_w, ln1_b,
     ln2_w, ln2_b, fc_w, fc_b, pj_w, pj_b, le_a, le_b, logit_scale) = params
    b, t, c, h, w = image.shape

    img_flat = image.reshape(b * t, c * h * w).astype(_BF16)
    group = jnp.arange(b * t, dtype=jnp.int32) // t
    attn_bias = jnp.where(group[:, None] == group[None, :],
                          0.0, _NEG_INF).astype(_F32)
    tail = (jnp.transpose(text_emb).astype(_F32),      # (D, n_text) MXU RHS
            attn_bias, pos.astype(_F32),
            in_w.astype(_BF16), in_b, out_w.astype(_BF16), out_b,
            ln1_w, ln1_b, ln2_w, ln2_b,
            fc_w.astype(_BF16), fc_b, pj_w.astype(_BF16), pj_b,
            le_a.astype(_BF16), le_b.astype(_BF16), logit_scale)
    return img_flat, w_vis.astype(_BF16), b_vis, tail


def videoclip_forward(image, text_emb, params):
    """image: (B, T, C, H, W) f32; text_emb: (n_text, D) f32.
    Returns (image_emb, image_emb_front, logits_new, logits_after)."""
    img_flat, w_vis_bf, b_vis, tail = _prepare(image, text_emb, params)
    feat = _visual_projection(img_flat, w_vis_bf, b_vis)     # (B*T, D) f32
    emb, front, logits = _fusion_head(feat, tail)
    B = image.shape[0]
    return emb, front, logits[:B], logits[B:]


def _reference(image, text_emb, params):
    """Pure-JAX reference with the same dtype policy (exact reciprocals)."""
    img_flat, w_vis_bf, b_vis, tail = _prepare(image, text_emb, params)
    feat = jnp.dot(img_flat, w_vis_bf, preferred_element_type=_F32) + b_vis
    emb, front, logits = _head_math(feat, *tail, fast=False)
    B = image.shape[0]
    return emb, front, logits[:B], logits[B:]


# ----------------------------------------------------------------------------
if __name__ == "__main__":
    B, T, C, H, W = 2, 8, 3, 16, 16
    D = 128                       # embed dim -> transformer_heads = D // 64 = 2
    N_TEXT = 8
    CONTEXT_LEN = 77
    P = C * H * W
    std = 0.02

    key = jax.random.PRNGKey(0)
    ks = jax.random.split(key, 10)

    # Deterministic parameter init (shapes from the module's __init__ /
    # init_weights).  Matmul weights are stored in bf16; all Linear weights are
    # passed as (in_features, out_features), i.e. transposed w.r.t. nn.Linear.
    w_vis = (std * jax.random.normal(ks[0], (P, D), _F32)).astype(_BF16)
    b_vis = jnp.zeros((1, D), _F32)
    pos_tbl = std * jax.random.normal(ks[1], (CONTEXT_LEN, D), _F32)  # Embedding
    in_w = (std * jax.random.normal(ks[2], (D, 3 * D), _F32)).astype(_BF16)
    in_b = jnp.zeros((1, 3 * D), _F32)
    out_w = (std * jax.random.normal(ks[3], (D, D), _F32)).astype(_BF16)
    out_b = jnp.zeros((1, D), _F32)
    ln1_w = jnp.ones((1, D), _F32)
    ln1_b = jnp.zeros((1, D), _F32)
    ln2_w = jnp.ones((1, D), _F32)
    ln2_b = jnp.zeros((1, D), _F32)
    fc_w = (std * jax.random.normal(ks[4], (D, 4 * D), _F32)).astype(_BF16)
    fc_b = jnp.zeros((1, 4 * D), _F32)
    pj_w = (std * jax.random.normal(ks[5], (4 * D, D), _F32)).astype(_BF16)
    pj_b = jnp.zeros((1, D), _F32)
    le_a = jax.random.normal(ks[6], (D, 16), _F32).astype(_BF16)   # randn(dim,16)
    le_b = jnp.zeros((16, D), _BF16)                               # zeros(16,dim)
    logit_scale = jnp.full((1, 1), jnp.log(1.0 / 0.07), _F32)

    params = [w_vis, b_vis, pos_tbl[:T], in_w, in_b, out_w, out_b,
              ln1_w, ln1_b, ln2_w, ln2_b, fc_w, fc_b, pj_w, pj_b,
              le_a, le_b, logit_scale]

    image = jax.random.normal(ks[7], (B, T, C, H, W), _F32)
    text_emb = jax.random.normal(ks[8], (N_TEXT, D), _F32)

    outs = jax.block_until_ready(videoclip_forward(image, text_emb, params))
    refs = jax.block_until_ready(_reference(image, text_emb, params))

    for o, r in zip(outs, refs):
        assert o.shape == r.shape and o.dtype == r.dtype
        assert jnp.allclose(o, r, rtol=2e-2, atol=2e-2), \
            float(jnp.max(jnp.abs(o - r)))

    print("KERNEL_OK")
</pallas_src>

<mosaic_0001>
module attributes {stable_mosaic.version = 11 : i64} {
  func.func @_vis_proj_kernel(%arg0: i32, %arg1: i32, %arg2: memref<16x384xbf16, #tpu.memory_space<vmem>>, %arg3: memref<384x128xbf16, #tpu.memory_space<vmem>>, %arg4: memref<1x128xf32, #tpu.memory_space<vmem>>, %arg5: memref<16x128xf32, #tpu.memory_space<vmem>>, %arg6: memref<16x128xf32, #tpu.memory_space<vmem>>) attributes {dimension_semantics = [#tpu.dimension_semantics<parallel>, #tpu.dimension_semantics<arbitrary>], iteration_bounds = array<i64: 1, 2>, scalar_prefetch = 0 : i64, scratch_operands = 1 : i64, tpu.core_type = #tpu.core_type<tc>, window_params = [{transform_indices = @transform_0, window_bounds = array<i64: 16, 384>}, {transform_indices = @transform_1, window_bounds = array<i64: 384, 128>}, {pipeline_mode = #tpu.pipeline_mode<synchronous>, transform_indices = @transform_2, window_bounds = array<i64: 1, 128>}, {transform_indices = @transform_3, window_bounds = array<i64: 16, 128>}]} {
    %c0_i32 = arith.constant 0 : i32
    %0 = arith.cmpi eq, %arg1, %c0_i32 : i32
    %1 = arith.extui %0 : i1 to i32
    %c0_i32_0 = arith.constant 0 : i32
    %2 = arith.cmpi ne, %1, %c0_i32_0 : i32
    scf.if %2 {
      %cst_9 = arith.constant 0.000000e+00 : f32
      %12 = vector.broadcast %cst_9 : f32 to vector<16x128xf32>
      %c0_10 = arith.constant 0 : index
      %c0_11 = arith.constant 0 : index
      %13 = vector.load %arg6[%c0_10, %c0_11] : memref<16x128xf32, #tpu.memory_space<vmem>>, vector<16x128xf32>
      tpu.vector_store %arg6[%c0_10, %c0_11], %12 {strides = array<i32>} : memref<16x128xf32, #tpu.memory_space<vmem>>, vector<16x128xf32>,
    } else {
    }
    %c0 = arith.constant 0 : index
    %c0_1 = arith.constant 0 : index
    %3 = vector.load %arg6[%c0, %c0_1] : memref<16x128xf32, #tpu.memory_space<vmem>>, vector<16x128xf32>
    %c0_2 = arith.constant 0 : index
    %c0_3 = arith.constant 0 : index
    %4 = vector.load %arg2[%c0_2, %c0_3] : memref<16x384xbf16, #tpu.memory_space<vmem>>, vector<16x384xbf16>
    %c0_4 = arith.constant 0 : index
    %c0_5 = arith.constant 0 : index
    %5 = vector.load %arg3[%c0_4, %c0_5] : memref<384x128xbf16, #tpu.memory_space<vmem>>, vector<384x128xbf16>
    %cst = arith.constant dense<0.000000e+00> : vector<16x128xf32>
    %6 = tpu.matmul %4, %5, %cst {dimension_numbers = #tpu.dot_dimension_numbers<[1], [0], [0], [1], [0, 0, 1, 1], [], []>} : vector<16x384xbf16>, vector<384x128xbf16>, vector<16x128xf32> -> vector<16x128xf32>
    %7 = arith.addf %3, %6 : vector<16x128xf32>
    %c0_6 = arith.constant 0 : index
    %c0_7 = arith.constant 0 : index
    %8 = vector.load %arg6[%c0_6, %c0_7] : memref<16x128xf32, #tpu.memory_space<vmem>>, vector<16x128xf32>
    tpu.vector_store %arg6[%c0_6, %c0_7], %7 {strides = array<i32>} : memref<16x128xf32, #tpu.memory_space<vmem>>, vector<16x128xf32>,
    %c1_i32 = arith.constant 1 : i32
    %9 = arith.cmpi eq, %arg1, %c1_i32 : i32
    %10 = arith.extui %9 : i1 to i32
    %c0_i32_8 = arith.constant 0 : i32
    %11 = arith.cmpi ne, %10, %c0_i32_8 : i32
    scf.if %11 {
      %c0_9 = arith.constant 0 : index
      %c0_10 = arith.constant 0 : index
      %12 = vector.load %arg6[%c0_9, %c0_10] : memref<16x128xf32, #tpu.memory_space<vmem>>, vector<16x128xf32>
      %c0_11 = arith.constant 0 : index
      %c0_12 = arith.constant 0 : index
      %13 = vector.load %arg4[%c0_11, %c0_12] : memref<1x128xf32, #tpu.memory_space<vmem>>, vector<1x128xf32>
      %14 = vector.broadcast %13 : vector<1x128xf32> to vector<16x128xf32>
      %15 = arith.addf %12, %14 : vector<16x128xf32>
      %c0_13 = arith.constant 0 : index
      %c0_14 = arith.constant 0 : index
      %16 = vector.load %arg5[%c0_13, %c0_14] : memref<16x128xf32, #tpu.memory_space<vmem>>, vector<16x128xf32>
      tpu.vector_store %arg5[%c0_13, %c0_14], %15 {strides = array<i32>} : memref<16x128xf32, #tpu.memory_space<vmem>>, vector<16x128xf32>,
    } else {
    }
    return
  }
  func.func @transform_0(%arg0: i32, %arg1: i32) -> (i32, i32) {
    %c0_i32 = arith.constant 0 : i32
    return %arg0, %arg1 : i32, i32
  }
  func.func @transform_1(%arg0: i32, %arg1: i32) -> (i32, i32) {
    %c0_i32 = arith.constant 0 : i32
    %c0_i32_0 = arith.constant 0 : i32
    return %arg1, %c0_i32 : i32, i32
  }
  func.func @transform_2(%arg0: i32, %arg1: i32) -> (i32, i32) {
    %c0_i32 = arith.constant 0 : i32
    %c0_i32_0 = arith.constant 0 : i32
    %c0_i32_1 = arith.constant 0 : i32
    return %c0_i32, %c0_i32_0 : i32, i32
  }
  func.func @transform_3(%arg0: i32, %arg1: i32) -> (i32, i32) {
    %c0_i32 = arith.constant 0 : i32
    %c0_i32_0 = arith.constant 0 : i32
    return %arg0, %c0_i32 : i32, i32
  }
}

</mosaic_0001>

<bundles_post_ra>
// kernel: tpu_custom_call.1
= control target key start
LH: loop header
LB: loop body
LE: loop exit
PB: predicated region body
PF: predicated region fallthrough
CT: control target
= control target key end

     0   :  { %8 = vsyncpa [#allocation4], 0  ;;  %s1276_s0 = inlined_call_operand.hbm [shape: bf16[16,768], index: 0, kind: input, shape index: {}]   ;;  %s1277_s1 = inlined_call_operand.hbm [shape: bf16[768,128], index: 1, kind: input, shape index: {}]   ;;  %s1278_s2 = inlined_call_operand.vmem [shape: f32[1,128], index: 2, kind: input, shape index: {}]   ;;  %s1279_s3 = inlined_call_operand.hbm [shape: f32[16,128], index: 3, kind: output, shape index: {}]  }
   0x1   :  { %10 = vsyncpa [#allocation4 + $0x1], 0 }
   0x2   :  { %11 = vsyncpa [#allocation7], 0 }
   0x3   :  { %13 = vsyncpa [#allocation7 + $0x1], 0 }
   0x4   :  { %14 = vsyncpa [#allocation5], 0  ;;  %s1047_s12 = smov 0   ;;  %s1049_s13 = smov 0  }
   0x5   :  { %s1051_s14 = smov 0   ;;  %s1053_s15 = smov 0  }
   0x6   :  { %s1055_s16 = smov 0   ;;  %s1057_s17 = smov 0  }
   0x7 LB: > { %s666_s18 = sadd.s32 4294967295, %s1012_s17   ;;  %s29_s19 = sadd.s32 1, %s1008_s16  ;;  %s1012_s17 = sphi %s1057_s17, %s20_s17   ;;  %s1008_s16 = sphi %s1055_s16, %s1291_s16   ;;  %s1004_s15 = sphi %s1053_s15, %s1290_s15   ;;  %s1000_s14 = sphi %s1051_s14, %s1289_s14   ;;  %s996_s13 = sphi %s1049_s13, %s1288_s13   ;;  %s992_s12 = sphi %s1047_s12, %s1287_s12  }
   0x8   : > { %p30_p0 = scmp.ge.s32.totalorder %s29_s19, 2  ;;  %s41_s20 = sadd.s32 1, %s1000_s14 }
   0x9   : > { %p48_p1 = scmp.ne.s32.totalorder %s1000_s14, %s996_s13  ;;  %p49_p2 = scmp.eq.s32.totalorder %s1012_s17, 0 }
   0xa   : > { %s1293_s19 = smov (%p30_p0, %s29_s19), 0  ;;  %p54_p4 = scmp.ne.s32.totalorder %s996_s13, %s992_s12 }
   0xb   : > { %p50_p3 = por %p49_p2, %p48_p1  ;;  %s37_s21 = ssub.s32 %s1008_s16, %s1293_s19 }
   0xc   : > { %p55_p5 = scmp.eq.s32.totalorder %s666_s18, 0  ;;  %p39_p6 = scmp.eq.s32.totalorder %s37_s21, 0 }
   0xd   : > { %p778_p8 = scmp.lt.s32.totalorder %s1012_s17, 2  ;;  %s1097_s24 = sand.u32 1, %s1000_s14  }
   0xe   : > { %p1088_p7 = por %p55_p5, %p54_p4  ;;  %s706_s25 = smul.u32 192, %s1008_s16 }
   0xf   : > { %s1094_s23 = scalar_select %p39_p6, %s1000_s14, %s41_s20  }
  0x10   : > { %s1281_s22 = scalar_select %p1088_p7, 1, 0 }
  0x11   : > { %s759_s26 = smul.u32 24, %s1097_s24  ;;  %s1104_s29 = scalar_lea.hbm %s1276_s0, %s706_s25 }
  0x12   : > { %p1106_p9 = pnand %p778_p8, %p50_p3  ;;  %s155_s6 = scalar_lea.sflag [#allocation4], %s1097_s24 }
  0x13   : > { %s158_s4 = scalar_lea.vmem [#allocation3], %s759_s26  ;;  %s868_s7 = scalar_lea.hbm %s1104_s29, 384 }
  0x14   : > { %s168_s5 = sshll.u32 %s158_s4, 4  ;;  %p869_p11 = scmp.ne.s32.totalorder %s1104_s29, %s868_s7  ;;  %s1110_s5 = int_to_ptr.vmem [resolvable:$true] %s168_s5 }
  0x15   : > { %p870_p12 = pneg %p1106_p9  ;;  %s873_s10 = scalar_lea.hbm %s1276_s0, 768 }
  0x16   : > { %p874_p1 = scmp.lt.u32.totalorder %s1104_s29, %s1276_s0  ;;  %p875_p2 = scmp.lt.u32.totalorder %s873_s10, %s868_s7 }
  0x17   : > { %p871_p13 = pnand %p870_p12, %p869_p11  ;;  %p877_p4 = scmp.lt.u32.totalorder %s868_s7, %s1104_s29 }
  0x18   : > { %p876_p3 = por %p875_p2, %p874_p1 }
  0x19   : > { %p872_p0 = pneg %p871_p13 }
  0x1a   : > { %p878_p5 = por %p877_p4, %p876_p3 }
  0x1c   : > { %p879_p6 = pnand %p878_p5, %p872_p0 }
  0x1e   : > { %882 = shalt.err (!%p879_p6)
}
  0x1f   : > { %s883_s20 = scalar_lea.vmem %s1110_s5, 384  ;;  %s1014_s21 = smov [#allocation3]  }
  0x20   : > { %p884_p8 = scmp.ne.s32.totalorder %s1110_s5, %s883_s20  ;;  %s888_s25 = sshll.u32 %s1014_s21, 4  ;;  %s889_s25 = int_to_ptr.vmem [resolvable:$false] %s888_s25 }
  0x21   : > { %s890_s26 = scalar_lea.vmem %s889_s25, 768  ;;  %p891_p10 = scmp.lt.s32.totalorder %s1110_s5, %s889_s25 }
  0x22   : > { %p886_p11 = pnand %p884_p8, %p870_p12  ;;  %p892_p1 = scmp.lt.s32.totalorder %s890_s26, %s883_s20 }
  0x24   : > { %p887_p13 = pneg %p886_p11  ;;  %p893_p2 = por %p892_p1, %p891_p10 }
  0x26   : > { %p894_p3 = pnand %p893_p2, %p887_p13 }
  0x28   : > { %897 = shalt.err (!%p894_p3)
}
  0x29   : > { %s1015_s27 = smov 384   ;;  %s1016_s28 = smov 192  }
  0x2a   : > { %s1017_s4 = smov 12   ;;  %p197_p0 = scmp.lt.s32.totalorder %s1012_s17, 3 }
  0x2b   : > { %774 = dma.hbm_to_vmem [thread:$0]  (!%p1106_p9), %s1104_s29, 384, %s1110_s5, %s155_s6, %s1015_s27, %s1016_s28, %s1017_s4  }
  0x2c   : > { %s760_s7 = smul.u32 192, %s1097_s24  ;;  %p1283_p10 = scmp.ge.s32.totalorder %s1012_s17, 1 }
  0x2d   : > { %s707_s9 = smul.u32 3072, %s1008_s16  ;;  %s179_s29 = scalar_lea.sflag [#allocation7], %s1097_s24 }
  0x2e   : > { %p1145_p4 = pnand %p1283_p10, %p197_p0  ;;  %s182_s20 = scalar_lea.vmem [#allocation6], %s760_s7 }
  0x2f   : > { %s1153_s12 = scalar_lea.hbm %s1277_s1, %s707_s9  ;;  %s189_s21 = sshll.u32 %s182_s20, 4  ;;  %s1155_s21 = int_to_ptr.vmem [resolvable:$true] %s189_s21 }
  0x30   : > { %s898_s5 = scalar_lea.hbm %s1153_s12, 3072  ;;  %s903_s26 = scalar_lea.hbm %s1277_s1, 6144 }
  0x31   : > { %p899_p5 = scmp.ne.s32.totalorder %s1153_s12, %s898_s5  ;;  %p904_p11 = scmp.lt.u32.totalorder %s1153_s12, %s1277_s1 }
  0x32   : > { %p905_p13 = scmp.lt.u32.totalorder %s903_s26, %s898_s5  ;;  %p907_p2 = scmp.lt.u32.totalorder %s898_s5, %s1153_s12 }
  0x33   : > { %p901_p6 = pnand %p899_p5, %p870_p12 }
  0x34   : > { %p906_p1 = por %p905_p13, %p904_p11 }
  0x35   : > { %p902_p8 = pneg %p901_p6 }
  0x36   : > { %p908_p3 = por %p907_p2, %p906_p1 }
  0x38   : > { %p909_p0 = pnand %p908_p3, %p902_p8 }
  0x3a   : > { %912 = shalt.err (!%p909_p0)
}
  0x3b   : > { %s913_s4 = scalar_lea.vmem %s1155_s21, 3072  ;;  %s1018_s7 = smov [#allocation6]  }
  0x3c   : > { %p914_p10 = scmp.ne.s32.totalorder %s1155_s21, %s913_s4  ;;  %s918_s9 = sshll.u32 %s1018_s7, 4  ;;  %s919_s9 = int_to_ptr.vmem [resolvable:$false] %s918_s9 }
  0x3d   : > { %s920_s10 = scalar_lea.vmem %s919_s9, 6144  ;;  %p921_p7 = scmp.lt.s32.totalorder %s1155_s21, %s919_s9 }
  0x3e   : > { %p916_p5 = pnand %p914_p10, %p870_p12  ;;  %p922_p11 = scmp.lt.s32.totalorder %s920_s10, %s913_s4 }
  0x40   : > { %p917_p6 = pneg %p916_p5  ;;  %p923_p13 = por %p922_p11, %p921_p7 }
  0x42   : > { %p924_p1 = pnand %p923_p13, %p917_p6 }
  0x44   : > { %927 = shalt.err (!%p924_p1)
}
  0x45   : > { %s1019_s11 = smov 64   ;;  %s1020_s20 = smov 4  }
  0x46   : > { %777 = dma.hbm_to_vmem [thread:$0]  (!%p1106_p9), %s1153_s12, 3072, %s1155_s21, %s179_s29, %s1019_s11, %s1019_s11, %s1020_s20  }
  0x47   : > { %201 = sbr.rel (%p1145_p4) target bundleno = 383 (0x17f), region = 32  ;;  %s203_s5 = sand.u32 (!%p1145_p4), 1, %s996_s13  }
  0x48   : > { %s761_s6 = smul.u32 (!%p1145_p4), 24, %s203_s5  ;;  %s204_s25 = scalar_lea.sflag (!%p1145_p4), [#allocation4], %s203_s5 }
  0x49   : > { %p1285_p7 = scmp.ne.s32.totalorder (!%p1145_p4), %s1281_s22, 0 }
  0x4a   : > { %s1186_s26 = scalar_lea.vmem (!%p1145_p4), [#allocation3], %s761_s6 }
  0x4e   : > { %979 = dma.done.wait (%p1285_p7), %s204_s25, 384  }
  0x4f   : > { %981 = vsyncadd (%p1285_p7), %s204_s25, 4294966912  ;;  %s762_s27 = smul.u32 192, %s203_s5  ;;  %s213_s30 = scalar_lea.sflag [#allocation7], %s203_s5 }
  0x51   : > { %s1192_s24 = scalar_lea.vmem [#allocation6], %s762_s27 }
  0x52   : > { %983 = dma.done.wait (%p1285_p7), %s213_s30, 3072  }
  0x53   : > { %985 = vsyncadd (%p1285_p7), %s213_s30, 4294964224  ;;  %p672_p9 = scmp.ne.s32.totalorder %s1004_s15, 0 }
  0x54   : > { %v1021_v0 = vmov (!%p672_p9), 0.0  }
  0x55   : > { %247 = sbr.rel (%p672_p9) target bundleno = 92 (0x5c), region = 44  ;;  %248 = vst [vmem:[#allocation2] sm:$0xff] (!%p672_p9), %v1021_v0  ;;  %249 = vst [vmem:[#allocation2 + $0x8] sm:$0xff] (!%p672_p9), %v1021_v0 }
  0x5c PF: > { %v840_v1 = vld [vmem:[%s1192_s24 + $0x40] sm:$0xff]   ;;  %v1022_v2 = vmov 0.0   ;;  %vm1023_vm0 = vmmov 0   ;;  %v843_v5 = vld [vmem:[%s1192_s24 + $0x48] sm:$0xff]   ;;  %v846_v8 = vld [vmem:[%s1192_s24 + $0x50] sm:$0xff]   ;;  %p700_p12 = scmp.ne.s32.totalorder %s1004_s15, 1 }
  0x5d   : > { %739 = vmatprep.subr.bf16.mxu1 %v1022_v2  ;;  %v841_v3 = vld [vmem:[%s1192_s24] sm:$0xff]   ;;  %708 = vmatprep.subr.bf16.mxu0 %v840_v1  ;;  %v844_v6 = vld [vmem:[%s1192_s24 + $0x8] sm:$0xff]   ;;  %v847_v9 = vld [vmem:[%s1192_s24 + $0x10] sm:$0xff]  }
  0x5e   : > { %v842_v4 = vld [vmem:[%s1192_s24 + $0x80] sm:$0xff]   ;;  %755 = vmatprep.mubr.msk.bf16.mxu1 %vm1023_vm0, %v1022_v2  ;;  %709 = vmatpush3.bf16.msra.mxu0 %v841_v3  ;;  %v845_v7 = vld [vmem:[%s1192_s24 + $0x88] sm:$0xff]   ;;  %v848_v10 = vld [vmem:[%s1192_s24 + $0x90] sm:$0xff]  }
  0x5f   : > { %740 = vmatpush3.bf16.msra.mxu1 %v842_v4  ;;  %710 = vmatprep.subr.bf16.mxu0 %v843_v5  ;;  %v849_v11 = vld [vmem:[%s1192_s24 + $0x58] sm:$0xff]   ;;  %v852_v14 = vld [vmem:[%s1192_s24 + $0x60] sm:$0xff]   ;;  %v855_v17 = vld [vmem:[%s1192_s24 + $0x68] sm:$0xff]  }
  0x60   : > { %741 = vmatprep.subr.bf16.mxu1 %v1022_v2  ;;  %v850_v12 = vld [vmem:[%s1192_s24 + $0x18] sm:$0xff]   ;;  %v853_v15 = vld [vmem:[%s1192_s24 + $0x20] sm:$0xff]   ;;  %v856_v18 = vld [vmem:[%s1192_s24 + $0x28] sm:$0xff]  }
  0x61   : > { %v851_v13 = vld [vmem:[%s1192_s24 + $0x98] sm:$0xff]   ;;  %v854_v16 = vld [vmem:[%s1192_s24 + $0xa0] sm:$0xff]   ;;  %v857_v19 = vld [vmem:[%s1192_s24 + $0xa8] sm:$0xff]  }
  0x62   : > { %711 = vmatpush3.bf16.msra.mxu0 %v844_v6  ;;  %v858_v20 = vld [vmem:[%s1192_s24 + $0x70] sm:$0xff]   ;;  %v861_v23 = vld [vmem:[%s1192_s24 + $0x78] sm:$0xff]   ;;  %v250_v35 = vld [vmem:[#allocation2] sm:$0xff] }
  0x63   : > { %742 = vmatpush3.bf16.msra.mxu1 %v845_v7  ;;  %712 = vmatprep.subr.bf16.mxu0 %v846_v8  ;;  %v859_v21 = vld [vmem:[%s1192_s24 + $0x30] sm:$0xff]   ;;  %v862_v25 = vld [vmem:[%s1192_s24 + $0x38] sm:$0xff]   ;;  %v251_v41 = vld [vmem:[#allocation2 + $0x8] sm:$0xff] }
  0x64   : > { %743 = vmatprep.subr.bf16.mxu1 %v1022_v2  ;;  %v860_v22 = vld [vmem:[%s1192_s24 + $0xb0] sm:$0xff]   ;;  %v863_v26 = vld [vmem:[%s1192_s24 + $0xb8] sm:$0xff]   ;;  %v701_v46 = vld [vmem:[%s1278_s2] ss:$0 sm:$0xff] (!%p700_p12) }
  0x65   : > { %v866_v24 = vld [vmem:[%s1186_s26 + $0x4] ss:$12 sps:$4 sm:$0xff]   ;;  %v864_v27 = vld [vmem:[%s1186_s26] ss:$12 sps:$4 sm:$0xff]   ;;  %v867_v28 = vld [vmem:[%s1186_s26 + $0x8] ss:$12 sps:$4 sm:$0xff]  }
  0x66   : > { %713 = vmatpush3.bf16.msra.mxu0 %v847_v9  ;;  %496 = vmatprep.mubr.bf16.mxu0 %v866_v24 }
  0x67   : > { %744 = vmatpush3.bf16.msra.mxu1 %v848_v10  ;;  %714 = vmatprep.subr.bf16.mxu0 %v849_v11 }
  0x68   : > { %745 = vmatprep.subr.bf16.mxu1 %v1022_v2 }
  0x6a   : > { %715 = vmatpush3.bf16.msra.mxu0 %v850_v12 }
  0x6b   : > { %746 = vmatpush3.bf16.msra.mxu1 %v851_v13  ;;  %716 = vmatprep.subr.bf16.mxu0 %v852_v14 }
  0x6c   : > { %747 = vmatprep.subr.bf16.mxu1 %v1022_v2 }
  0x6e   : > { %717 = vmatpush3.bf16.msra.mxu0 %v853_v15 }
  0x6f   : > { %748 = vmatpush3.bf16.msra.mxu1 %v854_v16  ;;  %718 = vmatprep.subr.bf16.mxu0 %v855_v17 }
  0x70   : > { %749 = vmatprep.subr.bf16.mxu1 %v1022_v2 }
  0x72   : > { %719 = vmatpush3.bf16.msra.mxu0 %v856_v18 }
  0x73   : > { %750 = vmatpush3.bf16.msra.mxu1 %v857_v19  ;;  %720 = vmatprep.subr.bf16.mxu0 %v858_v20 }
  0x74   : > { %751 = vmatprep.subr.bf16.mxu1 %v1022_v2 }
  0x76   : > { %721 = vmatpush3.bf16.msra.mxu0 %v859_v21 }
  0x77   : > { %752 = vmatpush3.bf16.msra.mxu1 %v860_v22  ;;  %722 = vmatprep.subr.bf16.mxu0 %v861_v23 }
  0x78   : > { %753 = vmatprep.subr.bf16.mxu1 %v1022_v2 }
  0x7a   : > { %723 = vmatpush3.bf16.msra.mxu0 %v862_v25 }
  0x7b   : > { %754 = vmatpush3.bf16.msra.mxu1 %v863_v26 }
  0x7d   : > { %497 = vmatmul.mubr.bf16.vlgmr.msra.gmra.mrb[0].mxu0 %v864_v27 }
  0x7e   : > { %756 = vmatmul.mubr.bf16.vlgmr.msra.gmra.mrb[0].mxu1 %v867_v28 }
 0x150   : > { %v724_v29 = vpop.f32.mrb[0].mxu0 }
 0x151   : > { %v539_v30 = vpop.f32.mrb[0].mxu1  ;;  %v725_v31 = vpop.f32.mrb[1].mxu0 }
 0x152   : > { %v726_v32 = vadd.f32 %v725_v31, %v724_v29  ;;  %v757_v33 = vpop.f32.mrb[1].mxu1  ;;  %v727_v34 = vpop.f32.mrb[2].mxu0 }
 0x153   : > { %v542_v36 = vpop.f32.mrb[2].mxu1  ;;  %v728_v37 = vpop.f32.mrb[3].mxu0 }
 0x154   : > { %v540_v38 = vadd.f32 %v726_v32, %v539_v30  ;;  %v729_v39 = vadd.f32 %v728_v37, %v727_v34  ;;  %v758_v40 = vpop.f32.mrb[3].mxu1  ;;  %553 = sbr.rel (%p700_p12) target bundleno = 357 (0x165), region = 48 }
 0x156   : > { %v546_v42 = vadd.f32 %v540_v38, %v250_v35  ;;  %v543_v43 = vadd.f32 %v729_v39, %v542_v36 }
 0x158   : > { %548 = vst [vmem:[#allocation2] sm:$0xff] %v546_v42  ;;  %v547_v44 = vadd.f32 %v543_v43, %v251_v41 }
 0x15a   : > { %549 = vst [vmem:[#allocation2 + $0x8] sm:$0xff] %v547_v44 }
 0x15f   : > { %v554_v45 = vld [vmem:[#allocation2] sm:$0xff] }
 0x160   : > { %v563_v48 = vadd.f32 %v701_v46, %v554_v45 }
 0x161   : > { %v555_v47 = vld [vmem:[#allocation2 + $0x8] sm:$0xff] }
 0x162   : > { %v564_v49 = vadd.f32 %v701_v46, %v555_v47  ;;  %565 = vst [vmem:[#allocation8] sm:$0xff] %v563_v48 }
 0x164   : > { %566 = vst [vmem:[#allocation8 + $0x8] sm:$0xff] %v564_v49 }
 0x165 PF: > { %p1232_p4 = scmp.eq.s32.totalorder %s666_s18, 1  ;;  %s1024_s15 = smov [#allocation8]  }
 0x166   : > { %s576_s21 = sshll.u32 %s1024_s15, 4  ;;  %s577_s21 = int_to_ptr.vmem [resolvable:$true] %s576_s21 }
 0x167   : > { %s928_s29 = scalar_lea.vmem %s577_s21, 256  ;;  %p935_p0 = scmp.lt.s32.totalorder %s577_s21, %s577_s21 }
 0x168   : > { %p929_p8 = scmp.ne.s32.totalorder %s577_s21, %s928_s29  ;;  %p936_p10 = scmp.lt.s32.totalorder %s928_s29, %s928_s29 }
 0x16a   : > { %p930_p2 = pnand %p929_p8, %p1232_p4  ;;  %p937_p5 = por %p936_p10, %p935_p0 }
 0x16c   : > { %p931_p3 = pneg %p930_p2 }
 0x16e   : > { %p938_p6 = pnand %p937_p5, %p931_p3 }
 0x170   : > { %941 = shalt.err (!%p938_p6)
}
 0x171   : > { %s942_s18 = scalar_lea.hbm %s1279_s3, 256 }
 0x172   : > { %p943_p11 = scmp.ne.s32.totalorder %s1279_s3, %s942_s18  ;;  %p948_p7 = scmp.lt.u32.totalorder %s942_s18, %s1279_s3 }
 0x174   : > { %p944_p13 = pnand %p943_p11, %p1232_p4 }
 0x176   : > { %p945_p1 = pneg %p944_p13 }
 0x178   : > { %p950_p9 = pnand %p948_p7, %p945_p1 }
 0x17a   : > { %953 = shalt.err (!%p950_p9)
}
 0x17b   : > { %s1025_s20 = smov 128   ;;  %s1026_s5 = smov 8  }
 0x17c   : > { %768 = dma.vmem_to_hbm [thread:$0]  (%p1232_p4), %s577_s21, 256, %s1279_s3, [#allocation5], %s1025_s20, %s1025_s20, %s1026_s5  }
 0x17d   : > { %987 = dma.done.wait (%p1232_p4), [#allocation5], 256  }
 0x17e   : > { %989 = vsyncadd (%p1232_p4), [#allocation5], 4294967040 }
 0x17f PF: > { %s20_s17 = sadd.s32 1, %s1012_s17   ;;  %s1287_s12 = smov %s996_s13 }
 0x180   : > { %p17_p12 = scmp.ge.s32.totalorder %s20_s17, 4   ;;  %s1288_s13 = smov %s1000_s14 }
 0x181   : > { %s1289_s14 = smov %s1094_s23  ;;  %s1290_s15 = smov %s1008_s16 }
 0x182   : > { %s1291_s16 = smov %s1293_s19  ;;  %19 = sbr.rel (!%p17_p12) target bundleno = 7 (0x7), region = 91 }
 0x189   :  { %592 = vsyncpa [#allocation4], 1 }
 0x18a   :  { %594 = vsyncpa [#allocation4 + $0x1], 1 }
 0x18b   :  { %595 = vsyncpa [#allocation7], 1 }
 0x18c   :  { %597 = vsyncpa [#allocation7 + $0x1], 1 }
 0x18d   :  { %598 = vsyncpa [#allocation5], 1 }
 0x18e   :  { %600 = vsyncpa [#allocation5 + $0x1], 1 }

</bundles_post_ra>
